<compile_context>
chip_gen: v7x
topology: tpu7x:2x2x1
jax: 0.10.0
libtpu: 0.0.40
codegen_flags: <defaults>
</compile_context>

<pallas_src>
import functools
import math

import jax
import jax.numpy as jnp
import numpy as np
from jax.experimental import pallas as pl
from jax.experimental.pallas import tpu as pltpu


def attention_kernel(x_ref, wf_ref, wo_ref, cos_ref, sin_ref, o_ref, oh_ref, *,
                     n_heads, head_dim):
    """One grid step == one batch element; everything lives in VMEM."""
    L = x_ref.shape[0]
    HD = n_heads * head_dim

    # Fused Q/K/rotary projection: one lane-dense (L, D) @ (D, 4*HD) matmul.
    # bf16 operand feeds, f32 accumulation.
    x16 = x_ref[...].astype(jnp.bfloat16)
    proj = jnp.dot(x16, wf_ref[...], preferred_element_type=jnp.float32)

    # cos/sin already interleaved + head-expanded to (L, HD) on the host.
    cos = cos_ref[...]
    sin = sin_ref[...]

    # Rotary: rot(t) = t*cos + (t@P)*sin; t@P is precomputed into wf columns.
    # 1/sqrt(head_dim) is already folded into the Q columns on the host.
    q = proj[:, 0:HD] * cos + proj[:, 2 * HD:3 * HD] * sin       # (L, HD) f32
    k = proj[:, HD:2 * HD] * cos + proj[:, 3 * HD:4 * HD] * sin  # (L, HD) f32
    # NOTE: reference does xv = repeat_kv(xk, n_rep)  ->  V *is* the rotated K.
    q16 = q.astype(jnp.bfloat16)
    k16 = k.astype(jnp.bfloat16)

    # Causal additive mask (0 / -1e30), single iota predicate, f32.
    row = jax.lax.broadcasted_iota(jnp.int32, (L, L), 0)
    col = jax.lax.broadcasted_iota(jnp.int32, (L, L), 1)
    amask = jnp.where(col <= row, 0.0, -1e30).astype(jnp.float32)

    # Per-head attention; results land in a (L, HD) VMEM scratch at static lane
    # offsets so the output projection is a single (L,HD)@(HD,OP) matmul.
    # TODO(synk): at real head counts move heads onto a grid axis (or
    # fori_loop(unroll=True)) so live ranges stay under 64 vregs.
    for h in range(n_heads):
        sl = slice(h * head_dim, (h + 1) * head_dim)
        qh = q16[:, sl]                                          # (L, hd) bf16
        kh = k16[:, sl]                                          # (L, hd) bf16
        # Contract last dims directly (no kh.T / XLU transpose).
        s = jax.lax.dot_general(qh, kh, (((1,), (1,)), ((), ())),
                                preferred_element_type=jnp.float32)
        s = s + amask                                            # f32
        m = jnp.max(s, axis=-1, keepdims=True)                   # f32
        p = jnp.exp(s - m)                                       # f32
        r = pl.reciprocal(jnp.sum(p, axis=-1, keepdims=True), approx=True)
        oh = jnp.dot(p.astype(jnp.bfloat16), kh,                 # PV (V == K)
                     preferred_element_type=jnp.float32) * r
        oh_ref[:, sl] = oh                                       # static lanes

    # Single output projection, lane-dense (L, 128) unmasked store.
    o_ref[...] = jnp.dot(oh_ref[...].astype(jnp.bfloat16), wo_ref[...],
                         preferred_element_type=jnp.float32)
    # dropout is p=0.0 in ModelArgs, so attn/resid dropout are no-ops.


def attention_forward(x, wq_t, wk_t, wo_t, freqs_cos, freqs_sin,
                      *, n_heads, head_dim):
    B, L, D = x.shape
    HD = n_heads * head_dim
    N = B * L
    OP = pl.cdiv(D, 128) * 128            # lane-dense padded output width

    # ---- host-side glue: fold rotary pair-swap + score scale into weights ----
    P = np.zeros((HD, HD), np.float32)
    for j in range(HD // 2):
        P[2 * j + 1, 2 * j] = -1.0        # (t@P)[:, 2j]   = -t[:, 2j+1]
        P[2 * j, 2 * j + 1] = 1.0         # (t@P)[:, 2j+1] =  t[:, 2j]
    P = jnp.asarray(P)
    wq_s = wq_t * (1.0 / math.sqrt(head_dim))                    # fold scale
    w_fused = jnp.concatenate([wq_s, wk_t, wq_s @ P, wk_t @ P],
                              axis=1).astype(jnp.bfloat16)       # (D, 4HD)
    if OP > D:
        wo_pad = jnp.concatenate(
            [wo_t, jnp.zeros((HD, OP - D), wo_t.dtype)], axis=1)
    else:
        wo_pad = wo_t
    wo_pad = wo_pad.astype(jnp.bfloat16)                         # (HD, OP)

    # Interleaved rotary tables, head-expanded on the host to (L, HD).
    cos_e = jnp.tile(jnp.repeat(freqs_cos, 2, axis=-1), (1, n_heads))
    sin_e = jnp.tile(jnp.repeat(freqs_sin, 2, axis=-1), (1, n_heads))

    x_flat = x.reshape(N, D)

    flops = (2 * N * D * (4 * HD)                 # fused projection
             + 2 * B * n_heads * L * L * head_dim  # Q.K^T
             + 2 * B * n_heads * L * L * head_dim  # P.V
             + 2 * N * HD * OP)                    # output projection
    transcendentals = B * n_heads * L * L + B * n_heads * L      # exp + recip
    bytes_accessed = int(x_flat.size * 4 + w_fused.size * 2 + wo_pad.size * 2
                         + cos_e.size * 4 + sin_e.size * 4 + N * OP * 4)

    kernel = functools.partial(attention_kernel, n_heads=n_heads,
                               head_dim=head_dim)
    out_pad = pl.pallas_call(
        kernel,
        out_shape=jax.ShapeDtypeStruct((N, OP), jnp.float32),
        grid=(B,),
        in_specs=[
            pl.BlockSpec((L, D), lambda b: (b, 0)),          # x (one batch row-slab)
            pl.BlockSpec((D, 4 * HD), lambda b: (0, 0)),     # fused Q/K/rot weights
            pl.BlockSpec((HD, OP), lambda b: (0, 0)),        # Wo, lane-padded
            pl.BlockSpec((L, HD), lambda b: (0, 0)),         # cos (L, HD)
            pl.BlockSpec((L, HD), lambda b: (0, 0)),         # sin (L, HD)
        ],
        out_specs=pl.BlockSpec((L, OP), lambda b: (b, 0)),
        scratch_shapes=[pltpu.VMEM((L, HD), jnp.float32)],   # per-head outputs
        compiler_params=pltpu.CompilerParams(
            dimension_semantics=("parallel",)),
        cost_estimate=pl.CostEstimate(flops=flops,
                                      transcendentals=transcendentals,
                                      bytes_accessed=bytes_accessed),
    )(x_flat, w_fused, wo_pad, cos_e, sin_e)
    return out_pad[:, :D].reshape(B, L, D)


def attention_reference(x, wq_t, wk_t, wo_t, freqs_cos, freqs_sin,
                        *, n_heads, head_dim):
    """Pure-JAX f32 reference mirroring the PyTorch forward (n_rep == 1)."""
    B, L, D = x.shape
    xq = (x @ wq_t).reshape(B, L, n_heads, head_dim)
    xk = (x @ wk_t).reshape(B, L, n_heads, head_dim)

    def rope(t):
        tr = t.reshape(B, L, n_heads, head_dim // 2, 2)
        r, i = tr[..., 0], tr[..., 1]
        c = freqs_cos[None, :, None, :]
        s = freqs_sin[None, :, None, :]
        return jnp.stack([r * c - i * s, r * s + i * c], -1).reshape(
            B, L, n_heads, head_dim)

    q, k = rope(xq), rope(xk)
    v = k                                    # xv = repeat_kv(xk, n_rep)
    q = q.transpose(0, 2, 1, 3)
    k = k.transpose(0, 2, 1, 3)
    v = v.transpose(0, 2, 1, 3)
    s = jnp.einsum('bhld,bhmd->bhlm', q, k) / math.sqrt(head_dim)
    mask = jnp.tril(jnp.ones((L, L), bool))
    s = jnp.where(mask[None, None], s, -jnp.inf)
    p = jax.nn.softmax(s, axis=-1)
    o = jnp.einsum('bhlm,bhmd->bhld', p, v)
    o = o.transpose(0, 2, 1, 3).reshape(B, L, n_heads * head_dim)
    return o @ wo_t


if __name__ == "__main__":
    # Small shapes consistent with the module: dim=32, n_heads=4 -> head_dim=8.
    B, L, D, n_heads = 2, 8, 32, 4
    head_dim = D // n_heads
    HD = n_heads * head_dim

    key = jax.random.PRNGKey(0)
    kx, kq, kk, ko = jax.random.split(key, 4)
    x = jax.random.normal(kx, (B, L, D), jnp.float32)
    # Linear weights, stored pre-transposed as (in_features, out_features).
    wq_t = jax.random.normal(kq, (D, HD), jnp.float32) * (1.0 / math.sqrt(D))
    wk_t = jax.random.normal(kk, (D, HD), jnp.float32) * (1.0 / math.sqrt(D))
    wo_t = jax.random.normal(ko, (HD, D), jnp.float32) * (1.0 / math.sqrt(HD))

    # Rotary frequency tables (llama-style), shapes (L, head_dim//2).
    inv_freq = 1.0 / (10000.0 ** (np.arange(0, head_dim, 2, dtype=np.float32)
                                  / head_dim))
    t = np.arange(L, dtype=np.float32)
    angles = np.outer(t, inv_freq)
    freqs_cos = jnp.asarray(np.cos(angles))
    freqs_sin = jnp.asarray(np.sin(angles))

    out = attention_forward(x, wq_t, wk_t, wo_t, freqs_cos, freqs_sin,
                            n_heads=n_heads, head_dim=head_dim)
    out = jax.block_until_ready(out)

    ref = attention_reference(x, wq_t, wk_t, wo_t, freqs_cos, freqs_sin,
                              n_heads=n_heads, head_dim=head_dim)
    # Mixed precision: bf16 MXU operand feeds (weights, q/k, p, oh) plus
    # pl.reciprocal(approx=True) in the softmax denominator -> compare against
    # the pure-f32 reference with a bf16-appropriate tolerance.
    np.testing.assert_allclose(np.asarray(out), np.asarray(ref),
                               rtol=5e-2, atol=5e-2)
    print("KERNEL_OK")
</pallas_src>

<mosaic_0001>
module attributes {stable_mosaic.version = 11 : i64} {
  func.func @attention_kernel(%arg0: i32, %arg1: memref<8x32xf32, #tpu.memory_space<vmem>>, %arg2: memref<32x128xbf16, #tpu.memory_space<vmem>>, %arg3: memref<32x128xbf16, #tpu.memory_space<vmem>>, %arg4: memref<8x32xf32, #tpu.memory_space<vmem>>, %arg5: memref<8x32xf32, #tpu.memory_space<vmem>>, %arg6: memref<8x128xf32, #tpu.memory_space<vmem>>, %arg7: memref<8x32xf32, #tpu.memory_space<vmem>>) attributes {dimension_semantics = [#tpu.dimension_semantics<parallel>], iteration_bounds = array<i64: 2>, scalar_prefetch = 0 : i64, scratch_operands = 1 : i64, tpu.core_type = #tpu.core_type<tc>, window_params = [{transform_indices = @transform_0, window_bounds = array<i64: 8, 32>}, {pipeline_mode = #tpu.pipeline_mode<synchronous>, transform_indices = @transform_1, window_bounds = array<i64: 32, 128>}, {pipeline_mode = #tpu.pipeline_mode<synchronous>, transform_indices = @transform_2, window_bounds = array<i64: 32, 128>}, {pipeline_mode = #tpu.pipeline_mode<synchronous>, transform_indices = @transform_3, window_bounds = array<i64: 8, 32>}, {pipeline_mode = #tpu.pipeline_mode<synchronous>, transform_indices = @transform_4, window_bounds = array<i64: 8, 32>}, {transform_indices = @transform_5, window_bounds = array<i64: 8, 128>}]} {
    %c0 = arith.constant 0 : index
    %c0_0 = arith.constant 0 : index
    %0 = vector.load %arg1[%c0, %c0_0] : memref<8x32xf32, #tpu.memory_space<vmem>>, vector<8x32xf32>
    %1 = arith.truncf %0 : vector<8x32xf32> to vector<8x32xbf16>
    %c0_1 = arith.constant 0 : index
    %c0_2 = arith.constant 0 : index
    %2 = vector.load %arg2[%c0_1, %c0_2] : memref<32x128xbf16, #tpu.memory_space<vmem>>, vector<32x128xbf16>
    %cst = arith.constant dense<0.000000e+00> : vector<8x128xf32>
    %3 = tpu.matmul %1, %2, %cst {dimension_numbers = #tpu.dot_dimension_numbers<[1], [0], [0], [1], [0, 0, 1, 1], [], []>} : vector<8x32xbf16>, vector<32x128xbf16>, vector<8x128xf32> -> vector<8x128xf32>
    %c0_3 = arith.constant 0 : index
    %c0_4 = arith.constant 0 : index
    %4 = vector.load %arg4[%c0_3, %c0_4] : memref<8x32xf32, #tpu.memory_space<vmem>>, vector<8x32xf32>
    %c0_5 = arith.constant 0 : index
    %c0_6 = arith.constant 0 : index
    %5 = vector.load %arg5[%c0_5, %c0_6] : memref<8x32xf32, #tpu.memory_space<vmem>>, vector<8x32xf32>
    %6 = vector.extract_strided_slice %3 {offsets = [0, 0], sizes = [8, 32], strides = [1, 1]} : vector<8x128xf32> to vector<8x32xf32>
    %7 = arith.mulf %6, %4 : vector<8x32xf32>
    %8 = vector.extract_strided_slice %3 {offsets = [0, 64], sizes = [8, 32], strides = [1, 1]} : vector<8x128xf32> to vector<8x32xf32>
    %9 = arith.mulf %8, %5 : vector<8x32xf32>
    %10 = arith.addf %7, %9 : vector<8x32xf32>
    %11 = vector.extract_strided_slice %3 {offsets = [0, 32], sizes = [8, 32], strides = [1, 1]} : vector<8x128xf32> to vector<8x32xf32>
    %12 = arith.mulf %11, %4 : vector<8x32xf32>
    %13 = vector.extract_strided_slice %3 {offsets = [0, 96], sizes = [8, 32], strides = [1, 1]} : vector<8x128xf32> to vector<8x32xf32>
    %14 = arith.mulf %13, %5 : vector<8x32xf32>
    %15 = arith.addf %12, %14 : vector<8x32xf32>
    %16 = arith.truncf %10 : vector<8x32xf32> to vector<8x32xbf16>
    %17 = arith.truncf %15 : vector<8x32xf32> to vector<8x32xbf16>
    %18 = tpu.iota {dimensions = array<i32: 0>} : vector<8x8xi32>
    %19 = tpu.iota {dimensions = array<i32: 1>} : vector<8x8xi32>
    %20 = arith.cmpi sle, %19, %18 : vector<8x8xi32>
    %cst_7 = arith.constant 0.000000e+00 : f32
    %cst_8 = arith.constant -1.000000e+30 : f32
    %21 = vector.broadcast %cst_7 : f32 to vector<8x8xf32>
    %22 = vector.broadcast %cst_8 : f32 to vector<8x8xf32>
    %23 = arith.select %20, %21, %22 : vector<8x8xi1>, vector<8x8xf32>
    %24 = vector.extract_strided_slice %16 {offsets = [0, 0], sizes = [8, 8], strides = [1, 1]} : vector<8x32xbf16> to vector<8x8xbf16>
    %25 = vector.extract_strided_slice %17 {offsets = [0, 0], sizes = [8, 8], strides = [1, 1]} : vector<8x32xbf16> to vector<8x8xbf16>
    %cst_9 = arith.constant dense<0.000000e+00> : vector<8x8xf32>
    %26 = tpu.matmul %24, %25, %cst_9 {dimension_numbers = #tpu.dot_dimension_numbers<[1], [1], [0], [0], [0, 0, 1, 0], [], []>} : vector<8x8xbf16>, vector<8x8xbf16>, vector<8x8xf32> -> vector<8x8xf32>
    %27 = arith.addf %26, %23 : vector<8x8xf32>
    %cst_10 = arith.constant dense<0xFF800000> : vector<8xf32>
    %28 = vector.multi_reduction <maximumf>, %27, %cst_10 [1] : vector<8x8xf32> to vector<8xf32>
    %29 = vector.shape_cast %28 : vector<8xf32> to vector<8x1xf32>
    %30 = vector.broadcast %29 : vector<8x1xf32> to vector<8x8xf32>
    %31 = arith.subf %27, %30 : vector<8x8xf32>
    %32 = math.exp %31 : vector<8x8xf32>
    %cst_11 = arith.constant dense<0.000000e+00> : vector<8xf32>
    %33 = vector.multi_reduction <add>, %32, %cst_11 [1] : vector<8x8xf32> to vector<8xf32>
    %34 = vector.shape_cast %33 : vector<8xf32> to vector<8x1xf32>
    %35 = tpu.reciprocal %34 {approx = true} : vector<8x1xf32> -> vector<8x1xf32>
    %36 = arith.truncf %32 : vector<8x8xf32> to vector<8x8xbf16>
    %cst_12 = arith.constant dense<0.000000e+00> : vector<8x8xf32>
    %37 = tpu.matmul %36, %25, %cst_12 {dimension_numbers = #tpu.dot_dimension_numbers<[1], [0], [0], [1], [0, 0, 1, 1], [], []>} : vector<8x8xbf16>, vector<8x8xbf16>, vector<8x8xf32> -> vector<8x8xf32>
    %38 = vector.broadcast %35 : vector<8x1xf32> to vector<8x8xf32>
    %39 = arith.mulf %37, %38 : vector<8x8xf32>
    %c0_13 = arith.constant 0 : index
    %c0_14 = arith.constant 0 : index
    %40 = vector.load %arg7[%c0_13, %c0_14] : memref<8x32xf32, #tpu.memory_space<vmem>>, vector<8x8xf32>
    tpu.vector_store %arg7[%c0_13, %c0_14], %39 {strides = array<i32>} : memref<8x32xf32, #tpu.memory_space<vmem>>, vector<8x8xf32>,
    %41 = vector.extract_strided_slice %16 {offsets = [0, 8], sizes = [8, 8], strides = [1, 1]} : vector<8x32xbf16> to vector<8x8xbf16>
    %42 = vector.extract_strided_slice %17 {offsets = [0, 8], sizes = [8, 8], strides = [1, 1]} : vector<8x32xbf16> to vector<8x8xbf16>
    %cst_15 = arith.constant dense<0.000000e+00> : vector<8x8xf32>
    %43 = tpu.matmul %41, %42, %cst_15 {dimension_numbers = #tpu.dot_dimension_numbers<[1], [1], [0], [0], [0, 0, 1, 0], [], []>} : vector<8x8xbf16>, vector<8x8xbf16>, vector<8x8xf32> -> vector<8x8xf32>
    %44 = arith.addf %43, %23 : vector<8x8xf32>
    %cst_16 = arith.constant dense<0xFF800000> : vector<8xf32>
    %45 = vector.multi_reduction <maximumf>, %44, %cst_16 [1] : vector<8x8xf32> to vector<8xf32>
    %46 = vector.shape_cast %45 : vector<8xf32> to vector<8x1xf32>
    %47 = vector.broadcast %46 : vector<8x1xf32> to vector<8x8xf32>
    %48 = arith.subf %44, %47 : vector<8x8xf32>
    %49 = math.exp %48 : vector<8x8xf32>
    %cst_17 = arith.constant dense<0.000000e+00> : vector<8xf32>
    %50 = vector.multi_reduction <add>, %49, %cst_17 [1] : vector<8x8xf32> to vector<8xf32>
    %51 = vector.shape_cast %50 : vector<8xf32> to vector<8x1xf32>
    %52 = tpu.reciprocal %51 {approx = true} : vector<8x1xf32> -> vector<8x1xf32>
    %53 = arith.truncf %49 : vector<8x8xf32> to vector<8x8xbf16>
    %cst_18 = arith.constant dense<0.000000e+00> : vector<8x8xf32>
    %54 = tpu.matmul %53, %42, %cst_18 {dimension_numbers = #tpu.dot_dimension_numbers<[1], [0], [0], [1], [0, 0, 1, 1], [], []>} : vector<8x8xbf16>, vector<8x8xbf16>, vector<8x8xf32> -> vector<8x8xf32>
    %55 = vector.broadcast %52 : vector<8x1xf32> to vector<8x8xf32>
    %56 = arith.mulf %54, %55 : vector<8x8xf32>
    %c0_19 = arith.constant 0 : index
    %c8 = arith.constant 8 : index
    %57 = vector.load %arg7[%c0_19, %c8] : memref<8x32xf32, #tpu.memory_space<vmem>>, vector<8x8xf32>
    tpu.vector_store %arg7[%c0_19, %c8], %56 {strides = array<i32>} : memref<8x32xf32, #tpu.memory_space<vmem>>, vector<8x8xf32>,
    %58 = vector.extract_strided_slice %16 {offsets = [0, 16], sizes = [8, 8], strides = [1, 1]} : vector<8x32xbf16> to vector<8x8xbf16>
    %59 = vector.extract_strided_slice %17 {offsets = [0, 16], sizes = [8, 8], strides = [1, 1]} : vector<8x32xbf16> to vector<8x8xbf16>
    %cst_20 = arith.constant dense<0.000000e+00> : vector<8x8xf32>
    %60 = tpu.matmul %58, %59, %cst_20 {dimension_numbers = #tpu.dot_dimension_numbers<[1], [1], [0], [0], [0, 0, 1, 0], [], []>} : vector<8x8xbf16>, vector<8x8xbf16>, vector<8x8xf32> -> vector<8x8xf32>
    %61 = arith.addf %60, %23 : vector<8x8xf32>
    %cst_21 = arith.constant dense<0xFF800000> : vector<8xf32>
    %62 = vector.multi_reduction <maximumf>, %61, %cst_21 [1] : vector<8x8xf32> to vector<8xf32>
    %63 = vector.shape_cast %62 : vector<8xf32> to vector<8x1xf32>
    %64 = vector.broadcast %63 : vector<8x1xf32> to vector<8x8xf32>
    %65 = arith.subf %61, %64 : vector<8x8xf32>
    %66 = math.exp %65 : vector<8x8xf32>
    %cst_22 = arith.constant dense<0.000000e+00> : vector<8xf32>
    %67 = vector.multi_reduction <add>, %66, %cst_22 [1] : vector<8x8xf32> to vector<8xf32>
    %68 = vector.shape_cast %67 : vector<8xf32> to vector<8x1xf32>
    %69 = tpu.reciprocal %68 {approx = true} : vector<8x1xf32> -> vector<8x1xf32>
    %70 = arith.truncf %66 : vector<8x8xf32> to vector<8x8xbf16>
    %cst_23 = arith.constant dense<0.000000e+00> : vector<8x8xf32>
    %71 = tpu.matmul %70, %59, %cst_23 {dimension_numbers = #tpu.dot_dimension_numbers<[1], [0], [0], [1], [0, 0, 1, 1], [], []>} : vector<8x8xbf16>, vector<8x8xbf16>, vector<8x8xf32> -> vector<8x8xf32>
    %72 = vector.broadcast %69 : vector<8x1xf32> to vector<8x8xf32>
    %73 = arith.mulf %71, %72 : vector<8x8xf32>
    %c0_24 = arith.constant 0 : index
    %c16 = arith.constant 16 : index
    %74 = vector.load %arg7[%c0_24, %c16] : memref<8x32xf32, #tpu.memory_space<vmem>>, vector<8x8xf32>
    tpu.vector_store %arg7[%c0_24, %c16], %73 {strides = array<i32>} : memref<8x32xf32, #tpu.memory_space<vmem>>, vector<8x8xf32>,
    %75 = vector.extract_strided_slice %16 {offsets = [0, 24], sizes = [8, 8], strides = [1, 1]} : vector<8x32xbf16> to vector<8x8xbf16>
    %76 = vector.extract_strided_slice %17 {offsets = [0, 24], sizes = [8, 8], strides = [1, 1]} : vector<8x32xbf16> to vector<8x8xbf16>
    %cst_25 = arith.constant dense<0.000000e+00> : vector<8x8xf32>
    %77 = tpu.matmul %75, %76, %cst_25 {dimension_numbers = #tpu.dot_dimension_numbers<[1], [1], [0], [0], [0, 0, 1, 0], [], []>} : vector<8x8xbf16>, vector<8x8xbf16>, vector<8x8xf32> -> vector<8x8xf32>
    %78 = arith.addf %77, %23 : vector<8x8xf32>
    %cst_26 = arith.constant dense<0xFF800000> : vector<8xf32>
    %79 = vector.multi_reduction <maximumf>, %78, %cst_26 [1] : vector<8x8xf32> to vector<8xf32>
    %80 = vector.shape_cast %79 : vector<8xf32> to vector<8x1xf32>
    %81 = vector.broadcast %80 : vector<8x1xf32> to vector<8x8xf32>
    %82 = arith.subf %78, %81 : vector<8x8xf32>
    %83 = math.exp %82 : vector<8x8xf32>
    %cst_27 = arith.constant dense<0.000000e+00> : vector<8xf32>
    %84 = vector.multi_reduction <add>, %83, %cst_27 [1] : vector<8x8xf32> to vector<8xf32>
    %85 = vector.shape_cast %84 : vector<8xf32> to vector<8x1xf32>
    %86 = tpu.reciprocal %85 {approx = true} : vector<8x1xf32> -> vector<8x1xf32>
    %87 = arith.truncf %83 : vector<8x8xf32> to vector<8x8xbf16>
    %cst_28 = arith.constant dense<0.000000e+00> : vector<8x8xf32>
    %88 = tpu.matmul %87, %76, %cst_28 {dimension_numbers = #tpu.dot_dimension_numbers<[1], [0], [0], [1], [0, 0, 1, 1], [], []>} : vector<8x8xbf16>, vector<8x8xbf16>, vector<8x8xf32> -> vector<8x8xf32>
    %89 = vector.broadcast %86 : vector<8x1xf32> to vector<8x8xf32>
    %90 = arith.mulf %88, %89 : vector<8x8xf32>
    %c0_29 = arith.constant 0 : index
    %c24 = arith.constant 24 : index
    %91 = vector.load %arg7[%c0_29, %c24] : memref<8x32xf32, #tpu.memory_space<vmem>>, vector<8x8xf32>
    tpu.vector_store %arg7[%c0_29, %c24], %90 {strides = array<i32>} : memref<8x32xf32, #tpu.memory_space<vmem>>, vector<8x8xf32>,
    %c0_30 = arith.constant 0 : index
    %c0_31 = arith.constant 0 : index
    %92 = vector.load %arg7[%c0_30, %c0_31] : memref<8x32xf32, #tpu.memory_space<vmem>>, vector<8x32xf32>
    %93 = arith.truncf %92 : vector<8x32xf32> to vector<8x32xbf16>
    %c0_32 = arith.constant 0 : index
    %c0_33 = arith.constant 0 : index
    %94 = vector.load %arg3[%c0_32, %c0_33] : memref<32x128xbf16, #tpu.memory_space<vmem>>, vector<32x128xbf16>
    %cst_34 = arith.constant dense<0.000000e+00> : vector<8x128xf32>
    %95 = tpu.matmul %93, %94, %cst_34 {dimension_numbers = #tpu.dot_dimension_numbers<[1], [0], [0], [1], [0, 0, 1, 1], [], []>} : vector<8x32xbf16>, vector<32x128xbf16>, vector<8x128xf32> -> vector<8x128xf32>
    %c0_35 = arith.constant 0 : index
    %c0_36 = arith.constant 0 : index
    %96 = vector.load %arg6[%c0_35, %c0_36] : memref<8x128xf32, #tpu.memory_space<vmem>>, vector<8x128xf32>
    tpu.vector_store %arg6[%c0_35, %c0_36], %95 {strides = array<i32>} : memref<8x128xf32, #tpu.memory_space<vmem>>, vector<8x128xf32>,
    return
  }
  func.func @transform_0(%arg0: i32) -> (i32, i32) {
    %c0_i32 = arith.constant 0 : i32
    %c0_i32_0 = arith.constant 0 : i32
    return %arg0, %c0_i32 : i32, i32
  }
  func.func @transform_1(%arg0: i32) -> (i32, i32) {
    %c0_i32 = arith.constant 0 : i32
    %c0_i32_0 = arith.constant 0 : i32
    %c0_i32_1 = arith.constant 0 : i32
    return %c0_i32, %c0_i32_0 : i32, i32
  }
  func.func @transform_2(%arg0: i32) -> (i32, i32) {
    %c0_i32 = arith.constant 0 : i32
    %c0_i32_0 = arith.constant 0 : i32
    %c0_i32_1 = arith.constant 0 : i32
    return %c0_i32, %c0_i32_0 : i32, i32
  }
  func.func @transform_3(%arg0: i32) -> (i32, i32) {
    %c0_i32 = arith.constant 0 : i32
    %c0_i32_0 = arith.constant 0 : i32
    %c0_i32_1 = arith.constant 0 : i32
    return %c0_i32, %c0_i32_0 : i32, i32
  }
  func.func @transform_4(%arg0: i32) -> (i32, i32) {
    %c0_i32 = arith.constant 0 : i32
    %c0_i32_0 = arith.constant 0 : i32
    %c0_i32_1 = arith.constant 0 : i32
    return %c0_i32, %c0_i32_0 : i32, i32
  }
  func.func @transform_5(%arg0: i32) -> (i32, i32) {
    %c0_i32 = arith.constant 0 : i32
    %c0_i32_0 = arith.constant 0 : i32
    return %arg0, %c0_i32 : i32, i32
  }
}

</mosaic_0001>

<bundles_post_ra>
// kernel: tpu_custom_call.1
= control target key start
LH: loop header
LB: loop body
LE: loop exit
PB: predicated region body
PF: predicated region fallthrough
CT: control target
= control target key end

     0   :  { %10 = vsyncpa [#allocation4], 0  ;;  %s1808_s0 = inlined_call_operand.hbm [shape: f32[16,32], index: 0, kind: input, shape index: {}]   ;;  %s1809_s1 = inlined_call_operand.hbm [shape: bf16[32,128], index: 1, kind: input, shape index: {}]   ;;  %s1810_s2 = inlined_call_operand.hbm [shape: bf16[32,128], index: 2, kind: input, shape index: {}]   ;;  %s1811_s3 = inlined_call_operand.vmem [shape: f32[8,32], index: 3, kind: input, shape index: {}]   ;;  %s1812_s4 = inlined_call_operand.hbm [shape: f32[8,32], index: 4, kind: input, shape index: {}]   ;;  %s1813_s5 = inlined_call_operand.hbm [shape: f32[16,128], index: 5, kind: output, shape index: {}]  }
   0x1   :  { %12 = vsyncpa [#allocation4 + $0x1], 0 }
   0x2   :  { %13 = vsyncpa [#allocation7], 0 }
   0x3   :  { %14 = vsyncpa [#allocation10], 0 }
   0x4   :  { %15 = vsyncpa [#allocation5], 0 }
   0x5   :  { %17 = vsyncpa [#allocation5 + $0x1], 0  ;;  %s1478_s18 = smov 0   ;;  %s1480_s19 = smov 0  }
   0x6   :  { %s1482_s20 = smov 0   ;;  %s1484_s21 = smov 0  }
   0x7 LB: > { %s1499_s22 = sadd.s32 4294967295, %s1424_s21   ;;  %s1004_s23 = sadd.s32 4294967294, %s1424_s21   ;;  %s1424_s21 = sphi %s1484_s21, %s1836_s21   ;;  %s1420_s20 = sphi %s1482_s20, %s1835_s20   ;;  %s1416_s19 = sphi %s1480_s19, %s1834_s19   ;;  %s1412_s18 = sphi %s1478_s18, %s1833_s18  }
   0x8   : > { %p43_p0 = scmp.ne.s32.totalorder %s1416_s19, %s1412_s18  ;;  %p1814_p1 = scmp.eq.s32.totalorder %s1499_s22, 0 }
   0x9   : > { %p157_p3 = scmp.eq.s32.totalorder %s1004_s23, 1  ;;  %p1005_p5 = scmp.ge.s32.totalorder %s1424_s21, 1 }
   0xa   : > { %p1508_p4 = por %p1814_p1, %p43_p0  ;;  %p164_p7 = scmp.lt.s32.totalorder %s1424_s21, 3 }
   0xb   : > { %p1513_p6 = por %p157_p3, %p43_p0  ;;  %s1426_s27 = smov [#allocation6]  }
   0xc   : > { %s1817_s24 = scalar_select %p1508_p4, 1, 0 }
   0xd   : > { %s1818_s25 = scalar_select %p1513_p6, 1, 0 }
   0xe   : > { %p1518_p8 = pnand %p1005_p5, %p164_p7  ;;  %s176_s28 = sshll.u32 %s1426_s27, 4  ;;  %s1522_s28 = int_to_ptr.vmem [resolvable:$true] %s176_s28 }
   0xf   : > { %s1427_s30 = smov [#allocation8]   ;;  %s1428_s7 = smov [#allocation9]  }
  0x10   : > { %s1819_s26 = scalar_select %p1518_p8, 1, 0 }
  0x11   : > { %p1138_p9 = pneg %p1518_p8  ;;  %s189_s6 = sshll.u32 %s1427_s30, 4  ;;  %s1533_s6 = int_to_ptr.vmem [resolvable:$true] %s189_s6 }
  0x12   : > { %s1535_s8 = sshll.u32 %s1428_s7, 4  ;;  %s1236_s11 = scalar_lea.hbm %s1809_s1, 256  ;;  %s207_s8 = int_to_ptr.vmem [resolvable:$true] %s1535_s8 }
  0x13   : > { %p1529_p11 = pnand %p1138_p9, %p1814_p1  ;;  %p1237_p12 = scmp.ne.s32.totalorder %s1809_s1, %s1236_s11 }
  0x14   : > { %p1243_p5 = scmp.lt.u32.totalorder %s1236_s11, %s1809_s1 }
  0x15   : > { %p1545_p13 = pneg %p1529_p11 }
  0x17   : > { %p1239_p0 = pnand %p1545_p13, %p1237_p12 }
  0x19   : > { %p1240_p3 = pneg %p1239_p0 }
  0x1b   : > { %p1245_p7 = pnand %p1243_p5, %p1240_p3 }
  0x1d   : > { %1248 = shalt.err (!%p1245_p7)
}
  0x1e   : > { %s1249_s17 = scalar_lea.vmem %s1522_s28, 256  ;;  %p1257_p2 = scmp.lt.s32.totalorder %s1522_s28, %s1522_s28 }
  0x1f   : > { %p1250_p9 = scmp.ne.s32.totalorder %s1522_s28, %s1249_s17  ;;  %p1258_p6 = scmp.lt.s32.totalorder %s1249_s17, %s1249_s17 }
  0x21   : > { %p1252_p10 = pnand %p1250_p9, %p1545_p13  ;;  %p1259_p12 = por %p1258_p6, %p1257_p2 }
  0x23   : > { %p1253_p1 = pneg %p1252_p10 }
  0x25   : > { %p1260_p0 = pnand %p1259_p12, %p1253_p1 }
  0x27   : > { %1263 = shalt.err (!%p1260_p0)
}
  0x28   : > { %s1429_s23 = smov 64   ;;  %s1430_s27 = smov 4  }
  0x29   : > { %1141 = dma.hbm_to_vmem [thread:$0]  (!%p1529_p11), %s1809_s1, 256, %s1522_s28, [#allocation7], %s1429_s23, %s1429_s23, %s1430_s27  }
  0x2a   : > { %s1264_s11 = scalar_lea.hbm %s1810_s2, 256 }
  0x2b   : > { %p1265_p2 = scmp.ne.s32.totalorder %s1810_s2, %s1264_s11  ;;  %p1271_p10 = scmp.lt.u32.totalorder %s1264_s11, %s1810_s2 }
  0x2d   : > { %p1267_p1 = pnand %p1265_p2, %p1545_p13 }
  0x2f   : > { %p1268_p6 = pneg %p1267_p1 }
  0x31   : > { %p1273_p3 = pnand %p1271_p10, %p1268_p6 }
  0x33   : > { %1276 = shalt.err (!%p1273_p3)
}
  0x34   : > { %s1277_s28 = scalar_lea.vmem %s1533_s6, 256  ;;  %p1285_p12 = scmp.lt.s32.totalorder %s1533_s6, %s1533_s6 }
  0x35   : > { %p1278_p5 = scmp.ne.s32.totalorder %s1533_s6, %s1277_s28  ;;  %p1286_p0 = scmp.lt.s32.totalorder %s1277_s28, %s1277_s28 }
  0x37   : > { %p1280_p7 = pnand %p1278_p5, %p1545_p13  ;;  %p1287_p2 = por %p1286_p0, %p1285_p12 }
  0x39   : > { %p1281_p9 = pneg %p1280_p7 }
  0x3b   : > { %p1288_p1 = pnand %p1287_p2, %p1281_p9 }
  0x3d   : > { %1291 = shalt.err (!%p1288_p1)
}
  0x3e   : > { %1144 = dma.hbm_to_vmem [thread:$0]  (!%p1529_p11), %s1810_s2, 256, %s1533_s6, [#allocation7], %s1429_s23, %s1429_s23, %s1430_s27  }
  0x3f   : > { %s1292_s10 = scalar_lea.hbm %s1812_s4, 128 }
  0x40   : > { %p1293_p6 = scmp.ne.s32.totalorder %s1812_s4, %s1292_s10  ;;  %p1299_p5 = scmp.lt.u32.totalorder %s1292_s10, %s1812_s4 }
  0x42   : > { %p1295_p10 = pnand %p1293_p6, %p1545_p13 }
  0x44   : > { %p1296_p3 = pneg %p1295_p10 }
  0x46   : > { %p1301_p7 = pnand %p1299_p5, %p1296_p3 }
  0x48   : > { %1304 = shalt.err (!%p1301_p7)
}
  0x49   : > { %s1305_s16 = scalar_lea.vmem %s207_s8, 128  ;;  %p1313_p2 = scmp.lt.s32.totalorder %s207_s8, %s207_s8 }
  0x4a   : > { %p1306_p9 = scmp.ne.s32.totalorder %s207_s8, %s1305_s16  ;;  %p1314_p1 = scmp.lt.s32.totalorder %s1305_s16, %s1305_s16 }
  0x4c   : > { %p1308_p12 = pnand %p1306_p9, %p1545_p13  ;;  %p1315_p4 = por %p1314_p1, %p1313_p2 }
  0x4e   : > { %p1309_p0 = pneg %p1308_p12 }
  0x50   : > { %p1316_p8 = pnand %p1315_p4, %p1309_p0 }
  0x52   : > { %1319 = shalt.err (!%p1316_p8)
}
  0x53   : > { %1147 = dma.hbm_to_vmem [thread:$0]  (!%p1529_p11), %s1812_s4, 128, %s207_s8, [#allocation10]  }
  0x54   : > { %s1609_s14 = sadd.s32 1, %s1424_s21   ;;  %s30_s29 = sadd.s32 1, %s1420_s20 }
  0x55   : > { %s27_s27 = ssub.s32 %s1424_s21, %s1609_s14  ;;  %p37_p8 = scmp.ne.s32.totalorder %s1420_s20, %s1416_s19 }
  0x56   : > { %p28_p4 = scmp.eq.s32.totalorder %s27_s27, 0  ;;  %p38_p13 = scmp.eq.s32.totalorder %s1424_s21, 0 }
  0x57   : > { %p1159_p6 = scmp.lt.s32.totalorder %s1424_s21, 2  ;;  %p1822_p3 = scmp.eq.s32.totalorder %s1499_s22, 1 }
  0x58   : > { %s1619_s28 = scalar_select %p28_p4, %s1420_s20, %s30_s29  }
  0x59   : > { %p39_p10 = por %p38_p13, %p37_p8  ;;  %p1623_p5 = por %p1822_p3, %p37_p8 }
  0x5a   : > { %s217_s30 = sand.u32 1, %s1420_s20   ;;  %s1011_s7 = sshll.u32 %s1424_s21, 7 }
  0x5b   : > { %s1010_s8 = sshll.u32 %s217_s30, 3  ;;  %s1632_s11 = scalar_lea.hbm %s1808_s0, %s1011_s7 }
  0x5c   : > { %s221_s12 = scalar_lea.vmem [#allocation3], %s1010_s8  ;;  %p1634_p11 = pnand %p1159_p6, %p39_p10 }
  0x5d   : > { %s228_s13 = sshll.u32 %s221_s12, 4  ;;  %s218_s16 = scalar_lea.sflag [#allocation4], %s217_s30  ;;  %s1638_s13 = int_to_ptr.vmem [resolvable:$true] %s228_s13 }
  0x5e   : > { %s1320_s6 = scalar_lea.hbm %s1632_s11, 128  ;;  %p1322_p9 = pneg %p1634_p11 }
  0x5f   : > { %p1321_p7 = scmp.ne.s32.totalorder %s1632_s11, %s1320_s6  ;;  %s1325_s29 = scalar_lea.hbm %s1808_s0, 256 }
  0x60   : > { %p1326_p2 = scmp.lt.u32.totalorder %s1632_s11, %s1808_s0  ;;  %p1327_p1 = scmp.lt.u32.totalorder %s1325_s29, %s1320_s6 }
  0x61   : > { %p1323_p12 = pnand %p1322_p9, %p1321_p7  ;;  %p1329_p8 = scmp.lt.u32.totalorder %s1320_s6, %s1632_s11 }
  0x62   : > { %p1328_p4 = por %p1327_p1, %p1326_p2 }
  0x63   : > { %p1324_p0 = pneg %p1323_p12 }
  0x64   : > { %p1330_p13 = por %p1329_p8, %p1328_p4 }
  0x66   : > { %p1331_p6 = pnand %p1330_p13, %p1324_p0 }
  0x68   : > { %1334 = shalt.err (!%p1331_p6)
}
  0x69   : > { %s1335_s30 = scalar_lea.vmem %s1638_s13, 128  ;;  %s1431_s9 = smov [#allocation3]  }
  0x6a   : > { %p1336_p10 = scmp.ne.s32.totalorder %s1638_s13, %s1335_s30  ;;  %s1340_s10 = sshll.u32 %s1431_s9, 4  ;;  %s1341_s10 = int_to_ptr.vmem [resolvable:$false] %s1340_s10 }
  0x6b   : > { %s1342_s12 = scalar_lea.vmem %s1341_s10, 256  ;;  %p1343_p12 = scmp.lt.s32.totalorder %s1638_s13, %s1341_s10 }
  0x6c   : > { %p1338_p3 = pnand %p1336_p10, %p1322_p9  ;;  %p1344_p2 = scmp.lt.s32.totalorder %s1342_s12, %s1335_s30 }
  0x6e   : > { %p1339_p7 = pneg %p1338_p3  ;;  %p1345_p1 = por %p1344_p2, %p1343_p12 }
  0x70   : > { %p1346_p4 = pnand %p1345_p1, %p1339_p7 }
  0x72   : > { %1349 = shalt.err (!%p1346_p4)
}
  0x73   : > { %1151 = dma.hbm_to_vmem [thread:$0]  (!%p1634_p11), %s1632_s11, 128, %s1638_s13, %s218_s16  }
  0x74   : > { %p1825_p0 = scmp.ne.s32.totalorder %s1819_s26, 0 }
  0x75   : > { %s1668_s6 = sand.u32 (!%p1825_p0), 1, %s1416_s19   ;;  %p1826_p9 = scmp.ne.s32.totalorder (!%p1825_p0), %s1817_s24, 0 }
  0x76   : > { %237 = sbr.rel (%p1825_p0) target bundleno = 1563 (0x61b), region = 40  ;;  %s1013_s23 = sshll.u32 (!%p1825_p0), %s1668_s6, 3 }
  0x77   : > { %s240_s27 = scalar_lea.sflag (!%p1825_p0), [#allocation4], %s1668_s6  ;;  %s243_s29 = scalar_lea.vmem (!%p1825_p0), [#allocation3], %s1013_s23 }
  0x7d   : > { %1395 = dma.done.wait (%p1826_p9), %s240_s27, 128  }
  0x7e   : > { %1397 = vsyncadd (%p1826_p9), %s240_s27, 4294967168  ;;  %p1827_p11 = scmp.eq.s32.totalorder %s1499_s22, 0 }
  0x80   : > { %1399 = dma.done.wait (%p1827_p11), [#allocation7], 512   ;;  %p1828_p8 = pmov %p1827_p11 }
  0x82   : > { %1401 = vsyncadd (%p1828_p8), [#allocation7], 4294966784  ;;  %p1829_p13 = pmov %p1828_p8 }
  0x83   : > { %p1830_p6 = pmov %p1828_p8 }
  0x84   : > { %1403 = dma.done.wait (%p1829_p13), [#allocation10], 128  }
  0x85   : > { %1405 = vsyncadd (%p1830_p6), [#allocation10], 4294967168  ;;  %v1432_v0 = vmov 0.0   ;;  %vm1433_vm0 = vmmov 0   ;;  %v1216_v1 = vld [vmem:[#allocation6] sm:$0xff]   ;;  %v1217_v2 = vld [vmem:[#allocation6 + $0x8] sm:$0xff]   ;;  %v374_v38 = vlaneseq }
  0x86   : > { %1058 = vmatprep.subr.bf16.mxu0 %v1432_v0  ;;  %1062 = vmatprep.mubr.msk.bf16.mxu0 %vm1433_vm0, %v1432_v0  ;;  %v283_v3 = vld [vmem:[%s243_s29] sm:$0xff]  ;;  %v346_v4 = vld [vmem:[#allocation9] sm:$0xff]  ;;  %v345_v5 = vld [vmem:[%s1811_s3] sm:$0xff]  ;;  %s1434_s11 = smov 96   ;;  %s1435_s13 = smov 32   ;;  %vm301_vm1 = vcmask 261120  }
  0x87   : > { %1066 = vmatprep.subr.bf16.mxu1 %v1432_v0  ;;  %1068 = vmatprep.mubr.msk.bf16.mxu1 %vm1433_vm0, %v1432_v0  ;;  %v284_v6 = vpack.c.bf16 %v283_v3, %v283_v3  ;;  %s1436_s15 = smov 64   ;;  %s1437_s16 = smov 88   ;;  %vm444_vm2 = vcmask 1043456   ;;  %vm383_vm3 = vcmask 64512   ;;  %v375_v39 = vshrl.u32 %v374_v38, 7 }
  0x88   : > { %1059 = vmatpush3.bf16.msra.mxu0 %v1216_v1  ;;  %363 = vrot.lane.b32.xlu0 %v346_v4, %s1434_s11  ;;  %s1438_s7 = smov 80   ;;  %s1439_s8 = smov 120   ;;  %v377_v40 = vand.u32 127, %v374_v38  ;;  %v1443_v41 = vmov -1e+30   ;;  %vm601_vm5 = vcmask 130112  }
  0x89   : > { %1060 = vmatprep.subr.bf16.mxu0 %v1432_v0  ;;  %359 = vrot.lane.b32.xlu1 %v345_v5, %s1435_s13  ;;  %s1440_s30 = smov 72   ;;  %s1441_s9 = smov 112   ;;  %vm714_vm6 = vcmask 195712   ;;  %vm827_vm7 = vcmask 261312  }
  0x8a   : > { %s1442_s10 = smov 104   ;;  %vm378_vm4 = vcmp.le.s32.totalorder %v377_v40, %v375_v39  ;;  %s1444_s12 = smov 8  }
  0x8b   : > { %v379_v42 = vsel %vm378_vm4, 0.0, %v1443_v41  ;;  %s1445_s27 = smov 16   ;;  %s1446_s29 = smov 24  }
  0x8c   : > { %1061 = vmatpush3.bf16.msra.mxu0 %v1217_v2  ;;  %349 = vrot.lane.b32.xlu0 %v346_v4, %s1436_s15  ;;  %s281_s24 = scalar_lea.vmem [#allocation11], %s1013_s23 }
  0x8d   : > { %1072 = vmatprep.subr.bf16.mxu0 %v1432_v0  ;;  %s905_s26 = sshll.u32 %s281_s24, 4  ;;  %s1761_s26 = int_to_ptr.vmem [resolvable:$true] %s905_s26 }
  0x8f   : > { %1063 = vmatmul.mubr.msk.bf16.vlgmr.msra.gmra.mrb[0].mxu0 %vm301_vm1, %v284_v6 }
  0x90   : > { %1074 = vmatprep.mubr.msk.bf16.mxu0 %vm1433_vm0, %v1432_v0 }
  0xfa   : > { %v364_v7 = vpop.permute.xlu0 %363 }
  0xfb   : > { %v360_v15 = vpop.permute.xlu1 %359 }
  0xfe   : > { %v350_v8 = vpop.permute.xlu0 %349 }
 0x162   : > { %v339_v9 = vpop.f32.mrb[0].mxu0 }
 0x163   : > { %v1064_v10 = vpop.f32.mrb[1].mxu0  ;;  %v366_v11 = vmul.f32 %v364_v7, %v339_v9  ;;  %v352_v12 = vmul.f32 %v350_v8, %v339_v9  ;;  %v362_v16 = vmul.f32 %v360_v15, %v339_v9  ;;  %v347_v20 = vmul.f32 %v345_v5, %v339_v9 }
 0x164   : > { %v342_v13 = vpop.f32.mrb[2].mxu0 }
 0x165   : > { %368 = vrot.lane.b32.xlu1 %v366_v11, %s1436_s15  ;;  %354 = vrot.lane.b32.xlu0 %v352_v12, %s1436_s15  ;;  %v1065_v14 = vpop.f32.mrb[3].mxu0 }
 0x1d7   : > { %v369_v17 = vpop.permute.xlu1 %368  ;;  %v355_v18 = vpop.permute.xlu0 %354 }
 0x1d8   : > { %v371_v19 = vadd.f32 %v369_v17, %v362_v16  ;;  %v357_v22 = vadd.f32 %v355_v18, %v347_v20 }
 0x1da   : > { %v373_v21 = vpack.c.bf16 %v371_v19, %v371_v19  ;;  %v372_v23 = vpack.c.bf16 %v357_v22, %v357_v22 }
 0x1dc   : > { %381 = vrot.lane.b32.xlu1 %v373_v21, %s1434_s11  ;;  %492 = vrot.lane.b32.xlu0 %v373_v21, %s1437_s16  ;;  %s1033_s11 = sshll.u32 %s1499_s22, 7  ;;  %s1447_s22 = smov [#allocation11]  }
 0x1dd   : > { %s1766_s16 = scalar_lea.hbm %s1813_s5, %s1033_s11  ;;  %s1354_s23 = sshll.u32 %s1447_s22, 4  ;;  %s1355_s23 = int_to_ptr.vmem [resolvable:$false] %s1354_s23 }
 0x1de   : > { %p1357_p12 = scmp.lt.s32.totalorder %s1761_s26, %s1355_s23 }
 0x1e0   : > { %605 = vrot.lane.b32.xlu0 %v373_v21, %s1438_s7  ;;  %490 = vrot.lane.b32.xlu1 %v372_v23, %s1439_s8  ;;  %s892_s7 = scalar_lea.sflag [#allocation5], %s1668_s6  ;;  %s1350_s8 = scalar_lea.vmem %s1761_s26, 128 }
 0x1e1   : > { %p1351_p10 = scmp.ne.s32.totalorder %s1761_s26, %s1350_s8 }
 0x1e3   : > { %p1352_p3 = pnand %p1351_p10, %p1623_p5 }
 0x1e4   : > { %718 = vrot.lane.b32.xlu0 %v373_v21, %s1440_s30  ;;  %603 = vrot.lane.b32.xlu1 %v372_v23, %s1441_s9  ;;  %s1356_s30 = scalar_lea.vmem %s1355_s23, 256 }
 0x1e5   : > { %p1353_p7 = pneg %p1352_p3  ;;  %p1358_p2 = scmp.lt.s32.totalorder %s1356_s30, %s1350_s8 }
 0x1e7   : > { %p1359_p1 = por %p1358_p2, %p1357_p12 }
 0x1e8   : > { %716 = vrot.lane.b32.xlu1 %v372_v23, %s1442_s10 }
 0x1e9   : > { %p1360_p4 = pnand %p1359_p1, %p1353_p7 }
 0x24e   : > { %v382_v24 = vpop.permute.xlu1 %381  ;;  %v493_v25 = vpop.permute.xlu0 %492 }
 0x24f   : > { %v445_v26 = vsel %vm444_vm2, %v382_v24, 0  ;;  %v1702_v27 = vsel %vm444_vm2, %v493_v25, 0  ;;  %v388_v28 = vsel %vm383_vm3, %v382_v24, 0  ;;  %v498_v31 = vsel %vm383_vm3, %v493_v25, 0 }
 0x250   : > { %1067 = vmatpush3.bf16.xpose.msra.mxu1 %v388_v28  ;;  %1073 = vmatpush3.bf16.msra.mxu0 %v445_v26 }
 0x251   : > { %1078 = vmatprep.subr.bf16.mxu1 %v1432_v0  ;;  %1084 = vmatprep.subr.bf16.mxu0 %v1432_v0 }
 0x252   : > { %v606_v29 = vpop.permute.xlu0 %605  ;;  %v491_v32 = vpop.permute.xlu1 %490 }
 0x253   : > { %v1708_v30 = vsel %vm444_vm2, %v606_v29, 0  ;;  %v611_v33 = vsel %vm383_vm3, %v606_v29, 0 }
 0x256   : > { %v1720_v34 = vpop.permute.xlu0 %718  ;;  %v604_v35 = vpop.permute.xlu1 %603 }
 0x257   : > { %1069 = vmatmul.mubr.msk.bf16.vlgmr.msra.gmra.mrb[0].mxu1 %vm383_vm3, %v372_v23  ;;  %v724_v36 = vsel %vm383_vm3, %v1720_v34, 0  ;;  %v780_v24 = vsel %vm444_vm2, %v1720_v34, 0 }
 0x258   : > { %1079 = vmatpush3.bf16.xpose.msra.mxu1 %v498_v31  ;;  %1080 = vmatprep.mubr.msk.bf16.mxu1 %vm1433_vm0, %v1432_v0 }
 0x259   : > { %1090 = vmatprep.subr.bf16.mxu1 %v1432_v0 }
 0x25a   : > { %v717_v37 = vpop.permute.xlu1 %716 }
 0x25f   : > { %1081 = vmatmul.mubr.msk.bf16.vlgmr.msra.gmra.mrb[4].mxu1 %vm383_vm3, %v491_v32 }
 0x260   : > { %1091 = vmatpush3.bf16.xpose.msra.mxu1 %v611_v33  ;;  %1092 = vmatprep.mubr.msk.bf16.mxu1 %vm1433_vm0, %v1432_v0 }
 0x261   : > { %1102 = vmatprep.subr.bf16.mxu1 %v1432_v0 }
 0x267   : > { %1093 = vmatmul.mubr.msk.bf16.vlgmr.msra.gmra.mrb[8].mxu1 %vm383_vm3, %v604_v35 }
 0x268   : > { %1103 = vmatpush3.bf16.xpose.msra.mxu1 %v724_v36  ;;  %1104 = vmatprep.mubr.msk.bf16.mxu1 %vm1433_vm0, %v1432_v0 }
 0x269   : > { %1114 = vmatprep.subr.bf16.mxu1 %v1432_v0 }
 0x26f   : > { %1105 = vmatmul.mubr.msk.bf16.vlgmr.msra.gmra.mrb[12].mxu1 %vm383_vm3, %v717_v37 }
 0x270   : > { %1118 = vmatprep.mubr.msk.bf16.mxu1 %vm1433_vm0, %v1432_v0 }
 0x32a   : > { %v424_v43 = vpop.f32.mrb[0].mxu1 }
 0x32b   : > { %v425_v44 = vadd.f32 %v424_v43, %v379_v42  ;;  %v1070_v45 = vpop.f32.mrb[1].mxu1 }
 0x32c   : > { %v427_v46 = vpop.f32.mrb[2].mxu1  ;;  %v1218_v45 = vld [vmem:[#allocation8] sm:$0xff]  }
 0x32d   : > { %v1071_v47 = vpop.f32.mrb[3].mxu1  ;;  %v430_v48 = vsel %vm383_vm3, %v425_v44, -inf  ;;  %1115 = vmatpush3.bf16.msra.mxu1 %v1218_v45 }
 0x32e   : > { %431 = vmax.xlane.f32.xlu0 %v430_v48  ;;  %v1219_v48 = vld [vmem:[#allocation8 + $0x8] sm:$0xff]   ;;  %1116 = vmatprep.subr.bf16.mxu1 %v1432_v0 }
 0x331   : > { %1117 = vmatpush3.bf16.msra.mxu1 %v1219_v48 }
 0x332   : > { %v534_v49 = vpop.f32.mrb[4].mxu1 }
 0x333   : > { %v535_v50 = vadd.f32 %v534_v49, %v379_v42  ;;  %v1082_v51 = vpop.f32.mrb[5].mxu1 }
 0x334   : > { %v537_v52 = vpop.f32.mrb[6].mxu1 }
 0x335   : > { %v1083_v53 = vpop.f32.mrb[7].mxu1  ;;  %v540_v54 = vsel %vm383_vm3, %v535_v50, -inf }
 0x336   : > { %541 = vmax.xlane.f32.xlu1 %v540_v54 }
 0x33a   : > { %v647_v55 = vpop.f32.mrb[8].mxu1 }
 0x33b   : > { %v648_v56 = vadd.f32 %v647_v55, %v379_v42  ;;  %v1094_v57 = vpop.f32.mrb[9].mxu1 }
 0x33c   : > { %v650_v58 = vpop.f32.mrb[10].mxu1 }
 0x33d   : > { %v1095_v59 = vpop.f32.mrb[11].mxu1  ;;  %v653_v60 = vsel %vm383_vm3, %v648_v56, -inf }
 0x33e   : > { %654 = vmax.xlane.f32.xlu0 %v653_v60 }
 0x342   : > { %v760_v61 = vpop.f32.mrb[12].mxu1 }
 0x343   : > { %v761_v62 = vadd.f32 %v760_v61, %v379_v42  ;;  %v1106_v63 = vpop.f32.mrb[13].mxu1 }
 0x344   : > { %v763_v1 = vpop.f32.mrb[14].mxu1 }
 0x345   : > { %v1107_v2 = vpop.f32.mrb[15].mxu1  ;;  %v766_v3 = vsel %vm383_vm3, %v761_v62, -inf }
 0x346   : > { %767 = vmax.xlane.f32.xlu0 %v766_v3 }
 0x3bb   : > { %v432_v4 = vpop.xlane.xlu0 %431 }
 0x3bc   : > { %v433_v5 = vsub.f32 %v425_v44, %v432_v4 }
 0x3be   : > { %v434_v6 = vmul.f32 1.442695, %v433_v5 }
 0x3c0   : > { %1220 = vpow2.f32 %v434_v6 }
 0x3c3   : > { %v542_v7 = vpop.xlane.xlu1 %541 }
 0x3c4   : > { %v543_v8 = vsub.f32 %v535_v50, %v542_v7 }
 0x3c6   : > { %v544_v9 = vmul.f32 1.442695, %v543_v8 }
 0x3c8   : > { %1222 = vpow2.f32 %v544_v9 }
 0x3ca   : > { %v1221_v10 = vpop.eup %1220 }
 0x3cb   : > { %v655_v11 = vpop.xlane.xlu0 %654  ;;  %v440_v12 = vpack.c.bf16 %v1221_v10, %v1221_v10  ;;  %v436_v25 = vsel %vm383_vm3, %v1221_v10, 0.0 }
 0x3cc   : > { %v656_v13 = vsub.f32 %v648_v56, %v655_v11 }
 0x3cd   : > { %1075 = vmatmul.mubr.msk.bf16.vlgmr.msra.gmra.mrb[4].mxu0 %vm383_vm3, %v440_v12 }
 0x3ce   : > { %v657_v14 = vmul.f32 1.442695, %v656_v13  ;;  %1085 = vmatpush3.bf16.msra.mxu0 %v1702_v27  ;;  %1086 = vmatprep.mubr.msk.bf16.mxu0 %vm1433_vm0, %v1432_v0 }
 0x3cf   : > { %1096 = vmatprep.subr.bf16.mxu0 %v1432_v0 }
 0x3d0   : > { %1224 = vpow2.f32 %v657_v14 }
 0x3d2   : > { %v1223_v15 = vpop.eup %1222 }
 0x3d3   : > { %v768_v16 = vpop.xlane.xlu0 %767  ;;  %v546_v17 = vsel %vm383_vm3, %v1223_v15, 0.0  ;;  %v550_v18 = vpack.c.bf16 %v1223_v15, %v1223_v15 }
 0x3d4   : > { %v769_v19 = vsub.f32 %v761_v62, %v768_v16  ;;  %547 = vadd.xlane.f32.xlu1 %v546_v17 }
 0x3d5   : > { %1087 = vmatmul.mubr.msk.bf16.vlgmr.msra.gmra.mrb[8].mxu0 %vm383_vm3, %v550_v18 }
 0x3d6   : > { %v770_v20 = vmul.f32 1.442695, %v769_v19  ;;  %1097 = vmatpush3.bf16.msra.mxu0 %v1708_v30  ;;  %1098 = vmatprep.mubr.msk.bf16.mxu0 %vm1433_vm0, %v1432_v0 }
 0x3d7   : > { %1108 = vmatprep.subr.bf16.mxu0 %v1432_v0 }
 0x3d8   : > { %1226 = vpow2.f32 %v770_v20 }
 0x3da   : > { %v1225_v21 = vpop.eup %1224 }
 0x3db   : > { %v659_v22 = vsel %vm383_vm3, %v1225_v21, 0.0  ;;  %v663_v23 = vpack.c.bf16 %v1225_v21, %v1225_v21 }
 0x3dc   : > { %660 = vadd.xlane.f32.xlu0 %v659_v22 }
 0x3dd   : > { %1099 = vmatmul.mubr.msk.bf16.vlgmr.msra.gmra.mrb[12].mxu0 %vm383_vm3, %v663_v23 }
 0x3de   : > { %1109 = vmatpush3.bf16.msra.mxu0 %v780_v24  ;;  %1110 = vmatprep.mubr.msk.bf16.mxu0 %vm1433_vm0, %v1432_v0 }
 0x3e0   : > { %437 = vadd.xlane.f32.xlu0 %v436_v25 }
 0x3e2   : > { %v1227_v26 = vpop.eup %1226 }
 0x3e3   : > { %v772_v27 = vsel %vm383_vm3, %v1227_v26, 0.0  ;;  %v776_v28 = vpack.c.bf16 %v1227_v26, %v1227_v26 }
 0x3e4   : > { %773 = vadd.xlane.f32.xlu1 %v772_v27 }
 0x3e5   : > { %1111 = vmatmul.mubr.msk.bf16.vlgmr.msra.gmra.mrb[16].mxu0 %vm383_vm3, %v776_v28 }
 0x461   : > { %v548_v31 = vpop.xlane.xlu1 %547 }
 0x469   : > { %v661_v29 = vpop.xlane.xlu0 %660 }
 0x46d   : > { %v438_v30 = vpop.xlane.xlu0 %437 }
 0x46e   : > { %1228 = vrcp.f32 %v438_v30 }
 0x46f   : > { %1230 = vrcp.f32 %v548_v31 }
 0x470   : > { %1232 = vrcp.f32 %v661_v29 }
 0x471   : > { %v774_v43 = vpop.xlane.xlu1 %773 }
 0x472   : > { %1234 = vrcp.f32 %v774_v43 }
 0x478   : > { %v1229_v32 = vpop.eup %1228 }
 0x479   : > { %v1231_v38 = vpop.eup %1230 }
 0x47a   : > { %v1233_v46 = vpop.eup %1232 }
 0x47c   : > { %v1235_v53 = vpop.eup %1234 }
 0x4a0   : > { %v481_v33 = vpop.f32.mrb[4].mxu0 }
 0x4a1   : > { %v487_v34 = vmul.f32 %v1229_v32, %v481_v33  ;;  %v1076_v35 = vpop.f32.mrb[5].mxu0 }
 0x4a2   : > { %v484_v36 = vpop.f32.mrb[6].mxu0 }
 0x4a3   : > { %488 = vst.msk [vmem:[#allocation2] sm:$0xff] %vm383_vm3, %v487_v34  ;;  %v1077_v37 = vpop.f32.mrb[7].mxu0 }
 0x4a8   : > { %v590_v39 = vpop.f32.mrb[8].mxu0 }
 0x4a9   : > { %v596_v40 = vmul.f32 %v1231_v38, %v590_v39  ;;  %v1088_v41 = vpop.f32.mrb[9].mxu0 }
 0x4aa   : > { %v593_v42 = vpop.f32.mrb[10].mxu0 }
 0x4ab   : > { %598 = vrot.lane.b32.xlu1 %v596_v40, %s1444_s12  ;;  %v1089_v44 = vpop.f32.mrb[11].mxu0 }
 0x4b0   : > { %v703_v47 = vpop.f32.mrb[12].mxu0 }
 0x4b1   : > { %v709_v49 = vmul.f32 %v1233_v46, %v703_v47  ;;  %v1100_v50 = vpop.f32.mrb[13].mxu0 }
 0x4b2   : > { %v706_v51 = vpop.f32.mrb[14].mxu0 }
 0x4b3   : > { %711 = vrot.lane.b32.xlu0 %v709_v49, %s1445_s27  ;;  %v1101_v52 = vpop.f32.mrb[15].mxu0 }
 0x4b8   : > { %v816_v54 = vpop.f32.mrb[16].mxu0 }
 0x4b9   : > { %v822_v55 = vmul.f32 %v1235_v53, %v816_v54  ;;  %v1112_v56 = vpop.f32.mrb[17].mxu0 }
 0x4ba   : > { %v819_v57 = vpop.f32.mrb[18].mxu0 }
 0x4bb   : > { %824 = vrot.lane.b32.xlu1 %v822_v55, %s1446_s29  ;;  %v1113_v58 = vpop.f32.mrb[19].mxu0 }
 0x51d   : > { %v599_v59 = vpop.permute.xlu1 %598 }
 0x51e   : > { %602 = vst.msk [vmem:[#allocation2] sm:$0xff] %vm601_vm5, %v599_v59 }
 0x525   : > { %v712_v0 = vpop.permute.xlu0 %711 }
 0x526   : > { %715 = vst.msk [vmem:[#allocation2] sm:$0xff] %vm714_vm6, %v712_v0 }
 0x52d   : > { %v825_v60 = vpop.permute.xlu1 %824 }
 0x52e   : > { %828 = vst.msk [vmem:[#allocation2] sm:$0xff] %vm827_vm7, %v825_v60 }
 0x535   : > { %v829_v61 = vld [vmem:[#allocation2] sm:$0xff] }
 0x536   : > { %v830_v62 = vpack.c.bf16 %v829_v61, %v829_v61 }
 0x538   : > { %1119 = vmatmul.mubr.msk.bf16.vlgmr.msra.gmra.mrb[16].mxu1 %vm301_vm1, %v830_v62 }
 0x60b   : > { %v884_v63 = vpop.f32.mrb[16].mxu1 }
 0x60c   : > { %890 = vst [vmem:[%s281_s24] sm:$0xff] %v884_v63  ;;  %v1120_v1 = vpop.f32.mrb[17].mxu1 }
 0x60d   : > { %v887_v2 = vpop.f32.mrb[18].mxu1 }
 0x60e   : > { %1363 = shalt.err (!%p1360_p4)
}
 0x60f   : > { %s1364_s6 = scalar_lea.hbm %s1766_s16, 128  ;;  %s1368_s12 = scalar_lea.hbm %s1813_s5, 256 }
 0x610   : > { %p1365_p0 = scmp.ne.s32.totalorder %s1766_s16, %s1364_s6  ;;  %p1369_p8 = scmp.lt.u32.totalorder %s1766_s16, %s1813_s5 }
 0x611   : > { %p1370_p13 = scmp.lt.u32.totalorder %s1368_s12, %s1364_s6  ;;  %p1372_p10 = scmp.lt.u32.totalorder %s1364_s6, %s1766_s16 }
 0x612   : > { %p1366_p9 = pnand %p1365_p0, %p1623_p5 }
 0x613   : > { %p1371_p6 = por %p1370_p13, %p1369_p8 }
 0x614   : > { %p1367_p11 = pneg %p1366_p9 }
 0x615   : > { %p1373_p3 = por %p1372_p10, %p1371_p6 }
 0x617   : > { %p1374_p7 = pnand %p1373_p3, %p1367_p11 }
 0x619   : > { %1377 = shalt.err (!%p1374_p7)
}
 0x61a   : > { %1136 = dma.vmem_to_hbm [thread:$0]  (%p1623_p5), %s1761_s26, 128, %s1766_s16, %s892_s7   ;;  %v1121_v3 = vpop.f32.mrb[19].mxu1 }
 0x61b PF: > { %s917_s24 = sand.u32 1, %s1412_s18   ;;  %p1831_p12 = scmp.ne.s32.totalorder %s1818_s25, 0 }
 0x61c   : > { %p1832_p2 = scmp.ge.s32.totalorder %s1424_s21, 2  ;;  %s918_s11 = scalar_lea.sflag [#allocation5], %s917_s24 }
 0x61e   : > { %p1153_p1 = pnand %p1832_p2, %p1831_p12 }
 0x620   : > { %1407 = dma.done.wait (!%p1153_p1), %s918_s11, 128  }
 0x621   : > { %1409 = vsyncadd (!%p1153_p1), %s918_s11, 4294967168  ;;  %p20_p4 = scmp.ge.s32.totalorder %s1609_s14, 4   ;;  %s1833_s18 = smov %s1416_s19 }
 0x622   : > { %s1834_s19 = smov %s1420_s20  ;;  %s1835_s20 = smov %s1619_s28 }
 0x623   : > { %s1836_s21 = smov %s1609_s14  ;;  %22 = sbr.rel (!%p20_p4) target bundleno = 7 (0x7), region = 97 }
 0x62a   :  { %923 = vsyncpa [#allocation4], 1 }
 0x62b   :  { %925 = vsyncpa [#allocation4 + $0x1], 1 }
 0x62c   :  { %926 = vsyncpa [#allocation7], 1 }
 0x62d   :  { %927 = vsyncpa [#allocation10], 1 }
 0x62e   :  { %928 = vsyncpa [#allocation5], 1 }
 0x62f   :  { %930 = vsyncpa [#allocation5 + $0x1], 1 }

</bundles_post_ra>
